<compile_context>
chip_gen: v6e
topology: v6e:2x2x1
jax: 0.10.0
libtpu: 0.0.40
codegen_flags: <defaults>
</compile_context>

<pallas_src>
import functools

import jax
import jax.numpy as jnp
from jax import lax
from jax.experimental import pallas as pl
from jax.experimental.pallas import tpu as pltpu

EPS = 1e-5  # PyTorch BatchNorm2d default


# --------------------------------------------------------------------------- #
# Fused kernel: phase 0 = conv(+residual) + stats, phase 1 = BN + ReLU.
# --------------------------------------------------------------------------- #
def _fused_kernel(xp_ref, wpk_ref, g_ref, bta_ref, pmat_ref, out_ref,
                  ybuf, sacc, qacc, *, B_blk, H, Hp_r, W, C, inv_m):
    WC = W * C
    p = pl.program_id(0)   # phase: 0 = conv + stats, 1 = BN + ReLU epilogue
    n = pl.program_id(1)   # batch-chunk index

    @pl.when((p == 0) & (n == 0))
    def _init():
        sacc[...] = jnp.zeros_like(sacc)
        qacc[...] = jnp.zeros_like(qacc)

    @pl.when(p == 0)
    def _conv_stats():
        # One MXU matmul for all B_blk images and all 3 row taps:
        # (B_blk*Hp_r, WpC) @ (WpC, 3*WC) -> (B_blk*Hp_r, 3*WC)
        r = jnp.dot(xp_ref[...], wpk_ref[...], preferred_element_type=jnp.float32)
        for b in range(B_blk):                 # static unroll: per-image combine
            base = b * Hp_r                    # 8-aligned (Hp_r % 8 == 0)
            y = (r[base + 0:base + H + 0, 0 * WC:1 * WC]
                 + r[base + 1:base + H + 1, 1 * WC:2 * WC]
                 + r[base + 2:base + H + 2, 2 * WC:3 * WC])
            row0 = (n * B_blk + b) * H
            if H % 8 == 0:
                row0 = pl.multiple_of(row0, 8)
            ybuf[pl.ds(row0, H), :] = y
            # one-pass batch statistics, per (w, c) lane
            sacc[...] += jnp.sum(y, axis=0, keepdims=True)
            qacc[...] += jnp.sum(y * y, axis=0, keepdims=True)

    @pl.when(p == 1)
    def _bn_relu():
        # per-lane sums -> per-channel sums broadcast back across all W*C lanes
        bsum = jnp.dot(sacc[...], pmat_ref[...], preferred_element_type=jnp.float32)
        bssq = jnp.dot(qacc[...], pmat_ref[...], preferred_element_type=jnp.float32)
        mean = bsum * inv_m
        var = jnp.maximum(bssq * inv_m - mean * mean, 0.0)   # biased (train mode)
        scale = g_ref[...] * lax.rsqrt(var + EPS)
        shift = bta_ref[...] - mean * scale
        row0 = n * (B_blk * H)
        if (B_blk * H) % 8 == 0:
            row0 = pl.multiple_of(row0, 8)
        y = ybuf[pl.ds(row0, B_blk * H), :]
        out_ref[...] = jnp.maximum(y * scale + shift, 0.0).astype(out_ref.dtype)


# --------------------------------------------------------------------------- #
# Wrapper helpers.
# --------------------------------------------------------------------------- #
def _banded_weight(w_hwio_eff, W, C):
    """Pack a (3,3,Cin,Cout) HWIO weight into a single (WpC, 3*WC) matrix whose
    three WC-wide column groups are the per-row-tap banded matrices, so the
    whole 3x3 conv over a lane-dense padded slab is ONE matmul per block."""
    Wp = W + 2
    in_lane = jnp.arange(Wp * C)
    out_lane = jnp.arange(W * C)
    cin = (in_lane % C)[:, None]                                   # (WpC, 1)
    cout = (out_lane % C)[None, :]                                 # (1, WC)
    dx = (in_lane // C)[:, None] - (out_lane // C)[None, :]        # (WpC, WC)
    valid = (dx >= 0) & (dx <= 2)
    dxc = jnp.clip(dx, 0, 2)
    bands = [jnp.where(valid, w_hwio_eff[dy][dxc, cin, cout], 0.0)
             for dy in range(3)]
    return jnp.concatenate(bands, axis=1)                          # (WpC, 3*WC)


def residual_block_forward(x_nchw, w_oihw, bias, gamma, beta):
    """PyTorch-equivalent forward: relu(bn(x + conv3x3(x) + bias)). NCHW in/out."""
    del bias  # per-channel conv bias is a no-op under train-mode BatchNorm
    N, C, H, W = x_nchw.shape
    Hp, Wp = H + 2, W + 2
    WC, WpC = W * C, Wp * C
    Hp_r = -(-Hp // 8) * 8          # padded image rows, sublane-tile aligned

    # Batch chunk: raise the matmul M dimension (several images per grid step).
    B_blk = 1
    for d in range(1, N + 1):
        if N % d == 0 and d * Hp_r <= 256:
            B_blk = d
    NB = N // B_blk

    # ---- layout plumbing: NCHW -> lane-dense padded slab (N*Hp_r, WpC) -----
    # TODO(synk): if the surrounding model can stay NHWC end-to-end, drop this
    # transpose/pad HBM pass and feed halo row blocks straight from x.
    x_nhwc = jnp.transpose(x_nchw, (0, 2, 3, 1)).astype(jnp.float32)
    xp = jnp.pad(x_nhwc, ((0, 0), (1, Hp_r - H - 1), (1, 1), (0, 0)))
    xp2d = xp.reshape(N * Hp_r, WpC)

    # Residual identity folded into the centre tap: y = x + conv(x) = conv_eff(x)
    w_hwio = jnp.transpose(w_oihw, (2, 3, 1, 0)).astype(jnp.float32)
    w_eff = w_hwio.at[1, 1].add(jnp.eye(C, dtype=jnp.float32))
    wpk = _banded_weight(w_eff, W, C)                              # (WpC, 3*WC)

    g_lane = jnp.tile(gamma.astype(jnp.float32), W).reshape(1, WC)
    b_lane = jnp.tile(beta.astype(jnp.float32), W).reshape(1, WC)
    lane = jnp.arange(WC)
    pmat = (lane[:, None] % C == lane[None, :] % C).astype(jnp.float32)  # (WC, WC)

    kernel = functools.partial(_fused_kernel, B_blk=B_blk, H=H, Hp_r=Hp_r,
                               W=W, C=C, inv_m=1.0 / float(N * H * W))

    out_flat = pl.pallas_call(
        kernel,
        out_shape=jax.ShapeDtypeStruct((N * H, WC), x_nchw.dtype),
        grid=(2, NB),                    # (phase, batch-chunk); phase is slow axis
        in_specs=[
            # input slab: chunk n in phase 0; pinned to the last chunk in phase 1
            # so no re-fetch happens across the phase boundary.
            pl.BlockSpec((B_blk * Hp_r, WpC),
                         lambda p, n: ((1 - p) * n + p * (NB - 1), 0)),
            pl.BlockSpec((WpC, 3 * WC), lambda p, n: (0, 0)),
            pl.BlockSpec((1, WC), lambda p, n: (0, 0)),
            pl.BlockSpec((1, WC), lambda p, n: (0, 0)),
            pl.BlockSpec((WC, WC), lambda p, n: (0, 0)),
        ],
        # output blocks only advance (and flush) during phase 1.
        out_specs=pl.BlockSpec((B_blk * H, WC), lambda p, n: (p * n, 0)),
        scratch_shapes=[
            # TODO(synk): for large N*H*W*C (resident y beyond ~16 MiB, esp. on
            # v7x's 64 MiB VMEM) switch phase 1 to recompute the conv instead
            # of keeping y resident.
            pltpu.VMEM((N * H, WC), jnp.float32),   # resident y = x + conv(x)
            pltpu.VMEM((1, WC), jnp.float32),       # per-lane sum
            pltpu.VMEM((1, WC), jnp.float32),       # per-lane sum of squares
        ],
        compiler_params=pltpu.CompilerParams(
            # phase axis is a carried dependency; batch-chunk axis shares the
            # stats scratch, so both stay "arbitrary".
            dimension_semantics=("arbitrary", "arbitrary")),
    )(xp2d, wpk, g_lane, b_lane, pmat)

    out_nhwc = out_flat.reshape(N, H, W, C)
    return jnp.transpose(out_nhwc, (0, 3, 1, 2))                   # back to NCHW


# --------------------------------------------------------------------------- #
# Pure-JAX reference (NCHW, same semantics as the PyTorch module in training).
# --------------------------------------------------------------------------- #
def reference_forward(x, w_oihw, bias, gamma, beta):
    conv = lax.conv_general_dilated(
        x, w_oihw, window_strides=(1, 1), padding=((1, 1), (1, 1)),
        dimension_numbers=("NCHW", "OIHW", "NCHW"),
    ) + bias.reshape(1, -1, 1, 1)
    y = x + conv
    mean = jnp.mean(y, axis=(0, 2, 3), keepdims=True)
    var = jnp.mean((y - mean) ** 2, axis=(0, 2, 3), keepdims=True)
    y_hat = (y - mean) * lax.rsqrt(var + EPS)
    return jnp.maximum(gamma.reshape(1, -1, 1, 1) * y_hat + beta.reshape(1, -1, 1, 1), 0.0)


if __name__ == "__main__":
    key = jax.random.PRNGKey(0)
    N, C, H, W = 2, 8, 16, 16          # W*C = 128 -> exactly lane-dense slabs

    k_x, k_w, k_b = jax.random.split(key, 3)
    x = jax.random.normal(k_x, (N, C, H, W), jnp.float32)          # PyTorch NCHW input

    # Deterministic Conv2d-style init (OIHW weight), BN gamma=1 / beta=0.
    fan_in = C * 3 * 3
    bound = 1.0 / jnp.sqrt(fan_in)
    w_oihw = jax.random.uniform(k_w, (C, C, 3, 3), jnp.float32, -bound, bound)
    bias = jax.random.uniform(k_b, (C,), jnp.float32, -bound, bound)
    gamma = jnp.ones((C,), jnp.float32)
    beta = jnp.zeros((C,), jnp.float32)

    fwd = jax.jit(residual_block_forward)
    out = jax.block_until_ready(fwd(x, w_oihw, bias, gamma, beta))

    ref = reference_forward(x, w_oihw, bias, gamma, beta)
    assert out.shape == x.shape
    err = float(jnp.max(jnp.abs(out - ref)))
    assert jnp.allclose(out, ref, rtol=1e-3, atol=1e-3), err

    print("KERNEL_OK")
</pallas_src>

<mosaic_0001>
module attributes {stable_mosaic.version = 11 : i64} {
  func.func @_fused_kernel(%arg0: i32, %arg1: i32, %arg2: memref<48x144xf32, #tpu.memory_space<vmem>>, %arg3: memref<144x384xf32, #tpu.memory_space<vmem>>, %arg4: memref<1x128xf32, #tpu.memory_space<vmem>>, %arg5: memref<1x128xf32, #tpu.memory_space<vmem>>, %arg6: memref<128x128xf32, #tpu.memory_space<vmem>>, %arg7: memref<32x128xf32, #tpu.memory_space<vmem>>, %arg8: memref<32x128xf32, #tpu.memory_space<vmem>>, %arg9: memref<1x128xf32, #tpu.memory_space<vmem>>, %arg10: memref<1x128xf32, #tpu.memory_space<vmem>>) attributes {dimension_semantics = [#tpu.dimension_semantics<arbitrary>, #tpu.dimension_semantics<arbitrary>], iteration_bounds = array<i64: 2, 1>, scalar_prefetch = 0 : i64, scratch_operands = 3 : i64, tpu.core_type = #tpu.core_type<tc>, window_params = [{transform_indices = @transform_0, window_bounds = array<i64: 48, 144>}, {pipeline_mode = #tpu.pipeline_mode<synchronous>, transform_indices = @transform_1, window_bounds = array<i64: 144, 384>}, {pipeline_mode = #tpu.pipeline_mode<synchronous>, transform_indices = @transform_2, window_bounds = array<i64: 1, 128>}, {pipeline_mode = #tpu.pipeline_mode<synchronous>, transform_indices = @transform_3, window_bounds = array<i64: 1, 128>}, {pipeline_mode = #tpu.pipeline_mode<synchronous>, transform_indices = @transform_4, window_bounds = array<i64: 128, 128>}, {transform_indices = @transform_5, window_bounds = array<i64: 32, 128>}]} {
    %c0_i32 = arith.constant 0 : i32
    %0 = arith.cmpi eq, %arg0, %c0_i32 : i32
    %c0_i32_0 = arith.constant 0 : i32
    %1 = arith.cmpi eq, %arg1, %c0_i32_0 : i32
    %2 = arith.andi %0, %1 : i1
    %3 = arith.extui %2 : i1 to i32
    %c0_i32_1 = arith.constant 0 : i32
    %4 = arith.cmpi ne, %3, %c0_i32_1 : i32
    scf.if %4 {
      %cst = arith.constant 0.000000e+00 : f32
      %11 = vector.broadcast %cst : f32 to vector<1x128xf32>
      %c0 = arith.constant 0 : index
      %c0_5 = arith.constant 0 : index
      %12 = vector.load %arg9[%c0, %c0_5] : memref<1x128xf32, #tpu.memory_space<vmem>>, vector<1x128xf32>
      tpu.vector_store %arg9[%c0, %c0_5], %11 {strides = array<i32>} : memref<1x128xf32, #tpu.memory_space<vmem>>, vector<1x128xf32>,
      %cst_6 = arith.constant 0.000000e+00 : f32
      %13 = vector.broadcast %cst_6 : f32 to vector<1x128xf32>
      %c0_7 = arith.constant 0 : index
      %c0_8 = arith.constant 0 : index
      %14 = vector.load %arg10[%c0_7, %c0_8] : memref<1x128xf32, #tpu.memory_space<vmem>>, vector<1x128xf32>
      tpu.vector_store %arg10[%c0_7, %c0_8], %13 {strides = array<i32>} : memref<1x128xf32, #tpu.memory_space<vmem>>, vector<1x128xf32>,
    } else {
    }
    %c0_i32_2 = arith.constant 0 : i32
    %5 = arith.cmpi eq, %arg0, %c0_i32_2 : i32
    %6 = arith.extui %5 : i1 to i32
    %c0_i32_3 = arith.constant 0 : i32
    %7 = arith.cmpi ne, %6, %c0_i32_3 : i32
    scf.if %7 {
      %c0 = arith.constant 0 : index
      %c0_5 = arith.constant 0 : index
      %11 = vector.load %arg2[%c0, %c0_5] : memref<48x144xf32, #tpu.memory_space<vmem>>, vector<48x144xf32>
      %c0_6 = arith.constant 0 : index
      %c0_7 = arith.constant 0 : index
      %12 = vector.load %arg3[%c0_6, %c0_7] : memref<144x384xf32, #tpu.memory_space<vmem>>, vector<144x384xf32>
      %cst = arith.constant dense<0.000000e+00> : vector<48x384xf32>
      %13 = tpu.matmul %11, %12, %cst {dimension_numbers = #tpu.dot_dimension_numbers<[1], [0], [0], [1], [0, 0, 1, 1], [], []>} : vector<48x144xf32>, vector<144x384xf32>, vector<48x384xf32> -> vector<48x384xf32>
      %14 = vector.extract_strided_slice %13 {offsets = [0, 0], sizes = [16, 128], strides = [1, 1]} : vector<48x384xf32> to vector<16x128xf32>
      %15 = vector.extract_strided_slice %13 {offsets = [1, 128], sizes = [16, 128], strides = [1, 1]} : vector<48x384xf32> to vector<16x128xf32>
      %16 = arith.addf %14, %15 : vector<16x128xf32>
      %17 = vector.extract_strided_slice %13 {offsets = [2, 256], sizes = [16, 128], strides = [1, 1]} : vector<48x384xf32> to vector<16x128xf32>
      %18 = arith.addf %16, %17 : vector<16x128xf32>
      %c2_i32 = arith.constant 2 : i32
      %19 = arith.muli %arg1, %c2_i32 : i32
      %c0_i32_8 = arith.constant 0 : i32
      %20 = arith.addi %19, %c0_i32_8 : i32
      %c16_i32 = arith.constant 16 : i32
      %21 = arith.muli %20, %c16_i32 : i32
      %22 = tpu.assume_multiple %21, 8 : i32
      %23 = arith.index_cast %22 : i32 to index
      %c0_9 = arith.constant 0 : index
      %24 = vector.load %arg8[%23, %c0_9] : memref<32x128xf32, #tpu.memory_space<vmem>>, vector<16x128xf32>
      tpu.vector_store %arg8[%23, %c0_9], %18 {strides = array<i32>} : memref<32x128xf32, #tpu.memory_space<vmem>>, vector<16x128xf32>,
      %c0_10 = arith.constant 0 : index
      %c0_11 = arith.constant 0 : index
      %25 = vector.load %arg9[%c0_10, %c0_11] : memref<1x128xf32, #tpu.memory_space<vmem>>, vector<1x128xf32>
      %cst_12 = arith.constant dense<0.000000e+00> : vector<128xf32>
      %26 = vector.multi_reduction <add>, %18, %cst_12 [0] : vector<16x128xf32> to vector<128xf32>
      %27 = vector.shape_cast %26 : vector<128xf32> to vector<1x128xf32>
      %28 = arith.addf %25, %27 : vector<1x128xf32>
      %c0_13 = arith.constant 0 : index
      %c0_14 = arith.constant 0 : index
      %29 = vector.load %arg9[%c0_13, %c0_14] : memref<1x128xf32, #tpu.memory_space<vmem>>, vector<1x128xf32>
      tpu.vector_store %arg9[%c0_13, %c0_14], %28 {strides = array<i32>} : memref<1x128xf32, #tpu.memory_space<vmem>>, vector<1x128xf32>,
      %c0_15 = arith.constant 0 : index
      %c0_16 = arith.constant 0 : index
      %30 = vector.load %arg10[%c0_15, %c0_16] : memref<1x128xf32, #tpu.memory_space<vmem>>, vector<1x128xf32>
      %31 = arith.mulf %18, %18 : vector<16x128xf32>
      %cst_17 = arith.constant dense<0.000000e+00> : vector<128xf32>
      %32 = vector.multi_reduction <add>, %31, %cst_17 [0] : vector<16x128xf32> to vector<128xf32>
      %33 = vector.shape_cast %32 : vector<128xf32> to vector<1x128xf32>
      %34 = arith.addf %30, %33 : vector<1x128xf32>
      %c0_18 = arith.constant 0 : index
      %c0_19 = arith.constant 0 : index
      %35 = vector.load %arg10[%c0_18, %c0_19] : memref<1x128xf32, #tpu.memory_space<vmem>>, vector<1x128xf32>
      tpu.vector_store %arg10[%c0_18, %c0_19], %34 {strides = array<i32>} : memref<1x128xf32, #tpu.memory_space<vmem>>, vector<1x128xf32>,
      %36 = vector.extract_strided_slice %13 {offsets = [24, 0], sizes = [16, 128], strides = [1, 1]} : vector<48x384xf32> to vector<16x128xf32>
      %37 = vector.extract_strided_slice %13 {offsets = [25, 128], sizes = [16, 128], strides = [1, 1]} : vector<48x384xf32> to vector<16x128xf32>
      %38 = arith.addf %36, %37 : vector<16x128xf32>
      %39 = vector.extract_strided_slice %13 {offsets = [26, 256], sizes = [16, 128], strides = [1, 1]} : vector<48x384xf32> to vector<16x128xf32>
      %40 = arith.addf %38, %39 : vector<16x128xf32>
      %c2_i32_20 = arith.constant 2 : i32
      %41 = arith.muli %arg1, %c2_i32_20 : i32
      %c1_i32_21 = arith.constant 1 : i32
      %42 = arith.addi %41, %c1_i32_21 : i32
      %c16_i32_22 = arith.constant 16 : i32
      %43 = arith.muli %42, %c16_i32_22 : i32
      %44 = tpu.assume_multiple %43, 8 : i32
      %45 = arith.index_cast %44 : i32 to index
      %c0_23 = arith.constant 0 : index
      %46 = vector.load %arg8[%45, %c0_23] : memref<32x128xf32, #tpu.memory_space<vmem>>, vector<16x128xf32>
      tpu.vector_store %arg8[%45, %c0_23], %40 {strides = array<i32>} : memref<32x128xf32, #tpu.memory_space<vmem>>, vector<16x128xf32>,
      %c0_24 = arith.constant 0 : index
      %c0_25 = arith.constant 0 : index
      %47 = vector.load %arg9[%c0_24, %c0_25] : memref<1x128xf32, #tpu.memory_space<vmem>>, vector<1x128xf32>
      %cst_26 = arith.constant dense<0.000000e+00> : vector<128xf32>
      %48 = vector.multi_reduction <add>, %40, %cst_26 [0] : vector<16x128xf32> to vector<128xf32>
      %49 = vector.shape_cast %48 : vector<128xf32> to vector<1x128xf32>
      %50 = arith.addf %47, %49 : vector<1x128xf32>
      %c0_27 = arith.constant 0 : index
      %c0_28 = arith.constant 0 : index
      %51 = vector.load %arg9[%c0_27, %c0_28] : memref<1x128xf32, #tpu.memory_space<vmem>>, vector<1x128xf32>
      tpu.vector_store %arg9[%c0_27, %c0_28], %50 {strides = array<i32>} : memref<1x128xf32, #tpu.memory_space<vmem>>, vector<1x128xf32>,
      %c0_29 = arith.constant 0 : index
      %c0_30 = arith.constant 0 : index
      %52 = vector.load %arg10[%c0_29, %c0_30] : memref<1x128xf32, #tpu.memory_space<vmem>>, vector<1x128xf32>
      %53 = arith.mulf %40, %40 : vector<16x128xf32>
      %cst_31 = arith.constant dense<0.000000e+00> : vector<128xf32>
      %54 = vector.multi_reduction <add>, %53, %cst_31 [0] : vector<16x128xf32> to vector<128xf32>
      %55 = vector.shape_cast %54 : vector<128xf32> to vector<1x128xf32>
      %56 = arith.addf %52, %55 : vector<1x128xf32>
      %c0_32 = arith.constant 0 : index
      %c0_33 = arith.constant 0 : index
      %57 = vector.load %arg10[%c0_32, %c0_33] : memref<1x128xf32, #tpu.memory_space<vmem>>, vector<1x128xf32>
      tpu.vector_store %arg10[%c0_32, %c0_33], %56 {strides = array<i32>} : memref<1x128xf32, #tpu.memory_space<vmem>>, vector<1x128xf32>,
    } else {
    }
    %c1_i32 = arith.constant 1 : i32
    %8 = arith.cmpi eq, %arg0, %c1_i32 : i32
    %9 = arith.extui %8 : i1 to i32
    %c0_i32_4 = arith.constant 0 : i32
    %10 = arith.cmpi ne, %9, %c0_i32_4 : i32
    scf.if %10 {
      %c0 = arith.constant 0 : index
      %c0_5 = arith.constant 0 : index
      %11 = vector.load %arg9[%c0, %c0_5] : memref<1x128xf32, #tpu.memory_space<vmem>>, vector<1x128xf32>
      %c0_6 = arith.constant 0 : index
      %c0_7 = arith.constant 0 : index
      %12 = vector.load %arg6[%c0_6, %c0_7] : memref<128x128xf32, #tpu.memory_space<vmem>>, vector<128x128xf32>
      %cst = arith.constant dense<0.000000e+00> : vector<1x128xf32>
      %13 = tpu.matmul %11, %12, %cst {dimension_numbers = #tpu.dot_dimension_numbers<[1], [0], [0], [1], [0, 0, 1, 1], [], []>} : vector<1x128xf32>, vector<128x128xf32>, vector<1x128xf32> -> vector<1x128xf32>
      %c0_8 = arith.constant 0 : index
      %c0_9 = arith.constant 0 : index
      %14 = vector.load %arg10[%c0_8, %c0_9] : memref<1x128xf32, #tpu.memory_space<vmem>>, vector<1x128xf32>
      %c0_10 = arith.constant 0 : index
      %c0_11 = arith.constant 0 : index
      %15 = vector.load %arg6[%c0_10, %c0_11] : memref<128x128xf32, #tpu.memory_space<vmem>>, vector<128x128xf32>
      %cst_12 = arith.constant dense<0.000000e+00> : vector<1x128xf32>
      %16 = tpu.matmul %14, %15, %cst_12 {dimension_numbers = #tpu.dot_dimension_numbers<[1], [0], [0], [1], [0, 0, 1, 1], [], []>} : vector<1x128xf32>, vector<128x128xf32>, vector<1x128xf32> -> vector<1x128xf32>
      %cst_13 = arith.constant 0.001953125 : f32
      %17 = vector.broadcast %cst_13 : f32 to vector<1x128xf32>
      %18 = arith.mulf %13, %17 : vector<1x128xf32>
      %cst_14 = arith.constant 0.001953125 : f32
      %19 = vector.broadcast %cst_14 : f32 to vector<1x128xf32>
      %20 = arith.mulf %16, %19 : vector<1x128xf32>
      %21 = arith.mulf %18, %18 : vector<1x128xf32>
      %22 = arith.subf %20, %21 : vector<1x128xf32>
      %cst_15 = arith.constant 0.000000e+00 : f32
      %23 = vector.broadcast %cst_15 : f32 to vector<1x128xf32>
      %24 = arith.maximumf %22, %23 : vector<1x128xf32>
      %c0_16 = arith.constant 0 : index
      %c0_17 = arith.constant 0 : index
      %25 = vector.load %arg4[%c0_16, %c0_17] : memref<1x128xf32, #tpu.memory_space<vmem>>, vector<1x128xf32>
      %cst_18 = arith.constant 9.99999974E-6 : f32
      %26 = vector.broadcast %cst_18 : f32 to vector<1x128xf32>
      %27 = arith.addf %24, %26 : vector<1x128xf32>
      %28 = math.rsqrt %27 : vector<1x128xf32>
      %29 = arith.mulf %25, %28 : vector<1x128xf32>
      %c0_19 = arith.constant 0 : index
      %c0_20 = arith.constant 0 : index
      %30 = vector.load %arg5[%c0_19, %c0_20] : memref<1x128xf32, #tpu.memory_space<vmem>>, vector<1x128xf32>
      %31 = arith.mulf %18, %29 : vector<1x128xf32>
      %32 = arith.subf %30, %31 : vector<1x128xf32>
      %c32_i32 = arith.constant 32 : i32
      %33 = arith.muli %arg1, %c32_i32 : i32
      %34 = tpu.assume_multiple %33, 8 : i32
      %35 = arith.index_cast %34 : i32 to index
      %c0_21 = arith.constant 0 : index
      %36 = vector.load %arg8[%35, %c0_21] : memref<32x128xf32, #tpu.memory_space<vmem>>, vector<32x128xf32>
      %37 = vector.broadcast %29 : vector<1x128xf32> to vector<32x128xf32>
      %38 = arith.mulf %36, %37 : vector<32x128xf32>
      %39 = vector.broadcast %32 : vector<1x128xf32> to vector<32x128xf32>
      %40 = arith.addf %38, %39 : vector<32x128xf32>
      %cst_22 = arith.constant 0.000000e+00 : f32
      %41 = vector.broadcast %cst_22 : f32 to vector<32x128xf32>
      %42 = arith.maximumf %40, %41 : vector<32x128xf32>
      %c0_23 = arith.constant 0 : index
      %c0_24 = arith.constant 0 : index
      %43 = vector.load %arg7[%c0_23, %c0_24] : memref<32x128xf32, #tpu.memory_space<vmem>>, vector<32x128xf32>
      tpu.vector_store %arg7[%c0_23, %c0_24], %42 {strides = array<i32>} : memref<32x128xf32, #tpu.memory_space<vmem>>, vector<32x128xf32>,
    } else {
    }
    return
  }
  func.func @transform_0(%arg0: i32, %arg1: i32) -> (i32, i32) {
    %c1_i32 = arith.constant 1 : i32
    %0 = arith.subi %c1_i32, %arg0 : i32
    %1 = arith.muli %0, %arg1 : i32
    %c0_i32 = arith.constant 0 : i32
    %2 = arith.muli %arg0, %c0_i32 : i32
    %3 = arith.addi %1, %2 : i32
    %c0_i32_0 = arith.constant 0 : i32
    %c0_i32_1 = arith.constant 0 : i32
    return %3, %c0_i32_0 : i32, i32
  }
  func.func @transform_1(%arg0: i32, %arg1: i32) -> (i32, i32) {
    %c0_i32 = arith.constant 0 : i32
    %c0_i32_0 = arith.constant 0 : i32
    %c0_i32_1 = arith.constant 0 : i32
    return %c0_i32, %c0_i32_0 : i32, i32
  }
  func.func @transform_2(%arg0: i32, %arg1: i32) -> (i32, i32) {
    %c0_i32 = arith.constant 0 : i32
    %c0_i32_0 = arith.constant 0 : i32
    %c0_i32_1 = arith.constant 0 : i32
    return %c0_i32, %c0_i32_0 : i32, i32
  }
  func.func @transform_3(%arg0: i32, %arg1: i32) -> (i32, i32) {
    %c0_i32 = arith.constant 0 : i32
    %c0_i32_0 = arith.constant 0 : i32
    %c0_i32_1 = arith.constant 0 : i32
    return %c0_i32, %c0_i32_0 : i32, i32
  }
  func.func @transform_4(%arg0: i32, %arg1: i32) -> (i32, i32) {
    %c0_i32 = arith.constant 0 : i32
    %c0_i32_0 = arith.constant 0 : i32
    %c0_i32_1 = arith.constant 0 : i32
    return %c0_i32, %c0_i32_0 : i32, i32
  }
  func.func @transform_5(%arg0: i32, %arg1: i32) -> (i32, i32) {
    %0 = arith.muli %arg0, %arg1 : i32
    %c0_i32 = arith.constant 0 : i32
    %c0_i32_0 = arith.constant 0 : i32
    return %0, %c0_i32 : i32, i32
  }
}

</mosaic_0001>

<bundles_post_ra>
// kernel: tile.13
= control target key start
LH: loop header
LB: loop body
LE: loop exit
PB: predicated region body
PF: predicated region fallthrough
CT: control target
= control target key end

     0   :  { %s28_s0 = inlined_call_operand.vmem [shape: f32[8], index: 0, kind: input, shape index: {}]   ;;  %s29_s1 = inlined_call_operand.vmem [shape: f32[16,8], index: 1, kind: output, shape index: {}]  }
   0x1   :  { %v4_v0 = vld [vmem:[%s28_s0] ss:$0 sm:$0xff] }
   0x2   :  { %5 = vst [vmem:[%s29_s1] sm:$0xff] %v4_v0  ;;  %8 = vst [vmem:[%s29_s1 + $0x8] sm:$0xff] %v4_v0 }

// kernel: tile.14
= control target key start
LH: loop header
LB: loop body
LE: loop exit
PB: predicated region body
PF: predicated region fallthrough
CT: control target
= control target key end

     0   :  { %s133_s10 = smov 120   ;;  %s134_s11 = smov 104   ;;  %vm3_vm0 = vcmask 64512   ;;  %vm9_vm1 = vcmask 1048512   ;;  %vm15_vm2 = vcmask 982912   ;;  %vm21_vm3 = vcmask 917312   ;;  %s209_s0 = inlined_call_operand.vmem [shape: f32[16,8], index: 0, kind: input, shape index: {}]   ;;  %s210_s1 = inlined_call_operand.vmem [shape: f32[1,128], index: 1, kind: output, shape index: {}]  }
   0x1   :  { %v103_v0 = vld [vmem:[%s209_s0 + $0xf] sm:$0x1]   ;;  %v105_v1 = vld [vmem:[%s209_s0 + $0xd] sm:$0x1]   ;;  %v104_v2 = vld [vmem:[%s209_s0 + $0xe] sm:$0x1]  }
   0x2   :  { %7 = vrot.lane.b32.xlu0 %v103_v0, %s133_s10  ;;  %19 = vrot.lane.b32.xlu1 %v105_v1, %s134_s11  ;;  %v106_v3 = vld [vmem:[%s209_s0 + $0xc] sm:$0x1]   ;;  %s135_s16 = smov 112   ;;  %s136_s17 = smov 96   ;;  %v107_v4 = vld [vmem:[%s209_s0 + $0xb] sm:$0x1]  }
   0x3   :  { %v108_v5 = vld [vmem:[%s209_s0 + $0xa] sm:$0x1]   ;;  %v2_v6 = vld [vmem:[%s209_s0] sm:$0x1]   ;;  %s137_s24 = smov 88   ;;  %s138_s25 = smov 80  }
   0x4   :  { %4 = vst.msk [vmem:[#allocation0] sm:$0x1] %vm3_vm0, %v2_v6   ;;  %v109_v7 = vld [vmem:[%s209_s0 + $0x9] sm:$0x1]   ;;  %v110_v8 = vld [vmem:[%s209_s0 + $0x8] sm:$0x1]  }
   0x5   :  { %s139_s30 = smov 72   ;;  %s140_s2 = smov 64   ;;  %v111_v9 = vld [vmem:[%s209_s0 + $0x7] sm:$0x1]   ;;  %v112_v10 = vld [vmem:[%s209_s0 + $0x6] sm:$0x1]  }
   0x6   :  { %13 = vrot.lane.b32.xlu0 %v104_v2, %s135_s16  ;;  %25 = vrot.lane.b32.xlu1 %v106_v3, %s136_s17  ;;  %s141_s7 = smov 56   ;;  %s142_s8 = smov 48   ;;  %v113_v11 = vld [vmem:[%s209_s0 + $0x5] sm:$0x1]   ;;  %v114_v12 = vld [vmem:[%s209_s0 + $0x4] sm:$0x1]  }
   0x7   :  { %s143_s13 = smov 40   ;;  %s144_s14 = smov 32   ;;  %v115_v13 = vld [vmem:[%s209_s0 + $0x3] sm:$0x1]   ;;  %v116_v14 = vld [vmem:[%s209_s0 + $0x2] sm:$0x1]  }
   0x8   :  { %s145_s19 = smov 24   ;;  %s146_s20 = smov 16   ;;  %v117_v15 = vld [vmem:[%s209_s0 + $0x1] sm:$0x1]   ;;  %vm27_vm4 = vcmask 851712   ;;  %vm33_vm5 = vcmask 786112  }
   0x9   :  { %s147_s0 = smov 8   ;;  %vm39_vm6 = vcmask 720512   ;;  %vm45_vm7 = vcmask 654912   ;;  %vm51_vm8 = vcmask 589312   ;;  %vm57_vm9 = vcmask 523712  }
   0xa   :  { %31 = vrot.lane.b32.xlu0 %v107_v4, %s137_s24  ;;  %37 = vrot.lane.b32.xlu1 %v108_v5, %s138_s25  ;;  %vm63_vm10 = vcmask 458112   ;;  %vm69_vm11 = vcmask 392512   ;;  %vm75_vm12 = vcmask 326912   ;;  %vm81_vm13 = vcmask 261312  }
   0xb   :  { %vm87_vm14 = vcmask 195712   ;;  %vm93_vm15 = vcmask 130112  }
   0xe   :  { %43 = vrot.lane.b32.xlu0 %v109_v7, %s139_s30  ;;  %49 = vrot.lane.b32.xlu1 %v110_v8, %s140_s2 }
  0x12   :  { %55 = vrot.lane.b32.xlu0 %v111_v9, %s141_s7  ;;  %61 = vrot.lane.b32.xlu1 %v112_v10, %s142_s8 }
  0x16   :  { %67 = vrot.lane.b32.xlu0 %v113_v11, %s143_s13  ;;  %73 = vrot.lane.b32.xlu1 %v114_v12, %s144_s14 }
  0x1a   :  { %79 = vrot.lane.b32.xlu0 %v115_v13, %s145_s19  ;;  %85 = vrot.lane.b32.xlu1 %v116_v14, %s146_s20 }
  0x1e   :  { %91 = vrot.lane.b32.xlu0 %v117_v15, %s147_s0 }
  0x74   :  { %v8_v16 = vpop.permute.xlu0 %7   ;;  %v20_v17 = vpop.permute.xlu1 %19  }
  0x75   :  { %10 = vst.msk [vmem:[#allocation0] sm:$0x1] %vm9_vm1, %v8_v16  }
  0x78   :  { %v14_v18 = vpop.permute.xlu0 %13   ;;  %v26_v19 = vpop.permute.xlu1 %25  }
  0x79   :  { %16 = vst.msk [vmem:[#allocation0] sm:$0x1] %vm15_vm2, %v14_v18  }
  0x7a   :  { %22 = vst.msk [vmem:[#allocation0] sm:$0x1] %vm21_vm3, %v20_v17  }
  0x7b   :  { %28 = vst.msk [vmem:[#allocation0] sm:$0x1] %vm27_vm4, %v26_v19  }
  0x7c   :  { %v32_v20 = vpop.permute.xlu0 %31   ;;  %v38_v21 = vpop.permute.xlu1 %37  }
  0x7d   :  { %34 = vst.msk [vmem:[#allocation0] sm:$0x1] %vm33_vm5, %v32_v20  }
  0x7e   :  { %40 = vst.msk [vmem:[#allocation0] sm:$0x1] %vm39_vm6, %v38_v21  }
  0x80   :  { %v44_v22 = vpop.permute.xlu0 %43   ;;  %v50_v23 = vpop.permute.xlu1 %49  }
  0x81   :  { %46 = vst.msk [vmem:[#allocation0] sm:$0x1] %vm45_vm7, %v44_v22  }
  0x82   :  { %52 = vst.msk [vmem:[#allocation0] sm:$0x1] %vm51_vm8, %v50_v23  }
  0x84   :  { %v56_v24 = vpop.permute.xlu0 %55   ;;  %v62_v25 = vpop.permute.xlu1 %61  }
  0x85   :  { %58 = vst.msk [vmem:[#allocation0] sm:$0x1] %vm57_vm9, %v56_v24  }
  0x86   :  { %64 = vst.msk [vmem:[#allocation0] sm:$0x1] %vm63_vm10, %v62_v25  }
  0x88   :  { %v68_v26 = vpop.permute.xlu0 %67   ;;  %v74_v27 = vpop.permute.xlu1 %73  }
  0x89   :  { %70 = vst.msk [vmem:[#allocation0] sm:$0x1] %vm69_vm11, %v68_v26  }
  0x8a   :  { %76 = vst.msk [vmem:[#allocation0] sm:$0x1] %vm75_vm12, %v74_v27  }
  0x8c   :  { %v80_v28 = vpop.permute.xlu0 %79   ;;  %v86_v29 = vpop.permute.xlu1 %85  }
  0x8d   :  { %82 = vst.msk [vmem:[#allocation0] sm:$0x1] %vm81_vm13, %v80_v28  }
  0x8e   :  { %88 = vst.msk [vmem:[#allocation0] sm:$0x1] %vm87_vm14, %v86_v29  }
  0x90   :  { %v92_v30 = vpop.permute.xlu0 %91  }
  0x91   :  { %94 = vst.msk [vmem:[#allocation0] sm:$0x1] %vm93_vm15, %v92_v30  }
  0x98   :  { %v99_v31 = vld [vmem:[#allocation0] sm:$0x1] }
  0x99   :  { %102 = vst [vmem:[%s210_s1] sm:$0x1] %v99_v31 }

// kernel: residual_block_forward.1
= control target key start
LH: loop header
LB: loop body
LE: loop exit
PB: predicated region body
PF: predicated region fallthrough
CT: control target
= control target key end

     0   :  { %s1160_s18 = smov 0   ;;  %s1162_s19 = smov 0   ;;  %s1528_s0 = inlined_call_operand.vmem [shape: f32[48,144], index: 0, kind: input, shape index: {}]   ;;  %s1529_s1 = inlined_call_operand.vmem [shape: f32[144,384], index: 1, kind: input, shape index: {}]   ;;  %s1530_s2 = inlined_call_operand.vmem [shape: f32[1,128], index: 2, kind: input, shape index: {}]   ;;  %s1531_s3 = inlined_call_operand.vmem [shape: f32[1,128], index: 3, kind: input, shape index: {}]   ;;  %s1532_s4 = inlined_call_operand.vmem [shape: f32[128,128], index: 4, kind: input, shape index: {}]   ;;  %s1533_s5 = inlined_call_operand.vmem [shape: f32[32,128], index: 5, kind: output, shape index: {}]  }
   0x1   :  { %s1164_s20 = smov 0  }
   0x2 LB: > { %s27_s21 = sadd.s32 1, %s1120_s19  ;;  %p945_p0 = scmp.ge.s32.totalorder %s1124_s20, 1  ;;  %s1124_s20 = sphi %s1164_s20, %s15_s20   ;;  %s1120_s19 = sphi %s1162_s19, %s1535_s19   ;;  %s1116_s18 = sphi %s1160_s18, %s1534_s18  }
   0x3   : > { %p29_p1 = scmp.ge.s32.totalorder %s27_s21, 2  ;;  %p211_p2 = scmp.lt.s32.totalorder %s1124_s20, 3 }
   0x5   : > { %s1537_s21 = smov (%p29_p1, %s27_s21), 0  ;;  %p212_p3 = pnand %p945_p0, %p211_p2 }
   0x6   : > { %p262_p4 = scmp.eq.s32.totalorder (!%p212_p3), %s1116_s18, 0 }
   0x7   : > { %215 = sbr.rel (%p212_p3) target bundleno = 575 (0x23f), region = 40 }
   0xc   : > { %267 = sbr.rel (!%p262_p4) target bundleno = 17 (0x11), region = 44  ;;  %v1126_v0 = vmov (%p262_p4), 0.0  }
   0xd   : > { %268 = vst [vmem:[#allocation3] sm:$0x1] (%p262_p4), %v1126_v0  ;;  %269 = vst [vmem:[#allocation4] sm:$0x1] (%p262_p4), %v1126_v0 }
  0x11 PF: > { %p947_p5 = scmp.ne.s32.totalorder %s1116_s18, 0 }
  0x13   : > { %272 = sbr.rel (%p947_p5) target bundleno = 303 (0x12f), region = 48 }
  0x18   : > { %v331_v1 = vld [vmem:[%s1529_s1 + $0x170] sm:$0xff]  ;;  %v330_v2 = vld [vmem:[%s1529_s1 + $0x168] sm:$0xff]  ;;  %v332_v3 = vld [vmem:[%s1529_s1 + $0x178] sm:$0xff]  ;;  %v1127_v4 = vmov 0.0   ;;  %vm339_vm0 = vcmask 130048   ;;  %vm555_vm1 = vcmask 1046528  }
  0x19   : > { %358 = vmatprep.subr.mxu0 %v331_v1  ;;  %457 = vmatprep.subr.mxu1 %v1127_v4  ;;  %v328_v5 = vld [vmem:[%s1529_s1 + $0x158] sm:$0xff]  ;;  %v327_v6 = vld [vmem:[%s1529_s1 + $0x150] sm:$0xff]  ;;  %v329_v7 = vld [vmem:[%s1529_s1 + $0x160] sm:$0xff]  ;;  %vm568_vm2 = vcmask 1045504  }
  0x1a   : > { %359 = vmatpush1.msra.mxu0 %v330_v2  ;;  %458 = vmatpush1.msra.mxu1 %v332_v3  ;;  %v325_v8 = vld [vmem:[%s1529_s1 + $0x140] sm:$0xff]  ;;  %v324_v9 = vld [vmem:[%s1529_s1 + $0x138] sm:$0xff]  ;;  %v326_v10 = vld [vmem:[%s1529_s1 + $0x148] sm:$0xff] }
  0x1b   : > { %360 = vmatprep.subr.mxu0 %v328_v5  ;;  %459 = vmatprep.subr.mxu1 %v1127_v4  ;;  %v322_v11 = vld [vmem:[%s1529_s1 + $0x128] sm:$0xff]  ;;  %v321_v12 = vld [vmem:[%s1529_s1 + $0x120] sm:$0xff]  ;;  %v323_v13 = vld [vmem:[%s1529_s1 + $0x130] sm:$0xff] }
  0x1c   : > { %361 = vmatpush1.msra.mxu0 %v327_v6  ;;  %460 = vmatpush1.msra.mxu1 %v329_v7  ;;  %v319_v14 = vld [vmem:[%s1529_s1 + $0x110] sm:$0xff]  ;;  %v318_v15 = vld [vmem:[%s1529_s1 + $0x108] sm:$0xff]  ;;  %v320_v16 = vld [vmem:[%s1529_s1 + $0x118] sm:$0xff] }
  0x1d   : > { %362 = vmatprep.subr.mxu0 %v325_v8  ;;  %461 = vmatprep.subr.mxu1 %v1127_v4  ;;  %v316_v17 = vld [vmem:[%s1529_s1 + $0xf8] sm:$0xff]  ;;  %v315_v18 = vld [vmem:[%s1529_s1 + $0xf0] sm:$0xff]  ;;  %v317_v19 = vld [vmem:[%s1529_s1 + $0x100] sm:$0xff] }
  0x1e   : > { %363 = vmatpush1.msra.mxu0 %v324_v9  ;;  %462 = vmatpush1.msra.mxu1 %v326_v10  ;;  %v313_v20 = vld [vmem:[%s1529_s1 + $0xe0] sm:$0xff]  ;;  %v312_v21 = vld [vmem:[%s1529_s1 + $0xd8] sm:$0xff]  ;;  %v314_v22 = vld [vmem:[%s1529_s1 + $0xe8] sm:$0xff] }
  0x1f   : > { %364 = vmatprep.subr.mxu0 %v322_v11  ;;  %463 = vmatprep.subr.mxu1 %v1127_v4  ;;  %v310_v23 = vld [vmem:[%s1529_s1 + $0xc8] sm:$0xff]  ;;  %v309_v24 = vld [vmem:[%s1529_s1 + $0xc0] sm:$0xff]  ;;  %v311_v25 = vld [vmem:[%s1529_s1 + $0xd0] sm:$0xff] }
  0x20   : > { %365 = vmatpush1.msra.mxu0 %v321_v12  ;;  %464 = vmatpush1.msra.mxu1 %v323_v13  ;;  %v307_v26 = vld [vmem:[%s1529_s1 + $0xb0] sm:$0xff]  ;;  %v306_v27 = vld [vmem:[%s1529_s1 + $0xa8] sm:$0xff]  ;;  %v308_v28 = vld [vmem:[%s1529_s1 + $0xb8] sm:$0xff] }
  0x21   : > { %366 = vmatprep.subr.mxu0 %v319_v14  ;;  %465 = vmatprep.subr.mxu1 %v1127_v4  ;;  %v304_v29 = vld [vmem:[%s1529_s1 + $0x98] sm:$0xff]  ;;  %v303_v30 = vld [vmem:[%s1529_s1 + $0x90] sm:$0xff]  ;;  %v305_v31 = vld [vmem:[%s1529_s1 + $0xa0] sm:$0xff] }
  0x22   : > { %367 = vmatpush1.msra.mxu0 %v318_v15  ;;  %466 = vmatpush1.msra.mxu1 %v320_v16  ;;  %v301_v32 = vld [vmem:[%s1529_s1 + $0x80] sm:$0xff]  ;;  %v300_v33 = vld [vmem:[%s1529_s1 + $0x78] sm:$0xff]  ;;  %v302_v34 = vld [vmem:[%s1529_s1 + $0x88] sm:$0xff] }
  0x23   : > { %368 = vmatprep.subr.mxu0 %v316_v17  ;;  %467 = vmatprep.subr.mxu1 %v1127_v4  ;;  %v298_v35 = vld [vmem:[%s1529_s1 + $0x68] sm:$0xff]  ;;  %v297_v36 = vld [vmem:[%s1529_s1 + $0x60] sm:$0xff]  ;;  %v299_v37 = vld [vmem:[%s1529_s1 + $0x70] sm:$0xff] }
  0x24   : > { %369 = vmatpush1.msra.mxu0 %v315_v18  ;;  %468 = vmatpush1.msra.mxu1 %v317_v19  ;;  %v295_v38 = vld [vmem:[%s1529_s1 + $0x50] sm:$0xff]  ;;  %v294_v39 = vld [vmem:[%s1529_s1 + $0x48] sm:$0xff]  ;;  %v296_v40 = vld [vmem:[%s1529_s1 + $0x58] sm:$0xff] }
  0x25   : > { %370 = vmatprep.subr.mxu0 %v313_v20  ;;  %469 = vmatprep.subr.mxu1 %v1127_v4  ;;  %v292_v41 = vld [vmem:[%s1529_s1 + $0x38] sm:$0xff]  ;;  %v291_v42 = vld [vmem:[%s1529_s1 + $0x30] sm:$0xff]  ;;  %v293_v43 = vld [vmem:[%s1529_s1 + $0x40] sm:$0xff] }
  0x26   : > { %371 = vmatpush1.msra.mxu0 %v312_v21  ;;  %470 = vmatpush1.msra.mxu1 %v314_v22  ;;  %v289_v44 = vld [vmem:[%s1529_s1 + $0x20] sm:$0xff]  ;;  %v288_v45 = vld [vmem:[%s1529_s1 + $0x18] sm:$0xff]  ;;  %v290_v46 = vld [vmem:[%s1529_s1 + $0x28] sm:$0xff] }
  0x27   : > { %372 = vmatprep.subr.mxu0 %v310_v23  ;;  %471 = vmatprep.subr.mxu1 %v1127_v4  ;;  %v286_v47 = vld [vmem:[%s1529_s1 + $0x8] sm:$0xff]  ;;  %v285_v48 = vld [vmem:[%s1529_s1] sm:$0xff]  ;;  %v287_v49 = vld [vmem:[%s1529_s1 + $0x10] sm:$0xff] }
  0x28   : > { %373 = vmatpush1.msra.mxu0 %v309_v24  ;;  %472 = vmatpush1.msra.mxu1 %v311_v25  ;;  %v337_v50 = vld [vmem:[%s1529_s1 + $0x1a0] sm:$0xff]  ;;  %v336_v51 = vld [vmem:[%s1529_s1 + $0x198] sm:$0xff]  ;;  %v338_v52 = vld [vmem:[%s1529_s1 + $0x1a8] sm:$0xff] }
  0x29   : > { %374 = vmatprep.subr.mxu0 %v307_v26  ;;  %473 = vmatprep.subr.mxu1 %v1127_v4  ;;  %v334_v53 = vld [vmem:[%s1529_s1 + $0x188] sm:$0xff]  ;;  %v333_v54 = vld [vmem:[%s1529_s1 + $0x180] sm:$0xff]  ;;  %v335_v56 = vld [vmem:[%s1529_s1 + $0x190] sm:$0xff] }
  0x2a   : > { %375 = vmatpush1.msra.mxu0 %v306_v27  ;;  %474 = vmatpush1.msra.mxu1 %v308_v28  ;;  %v274_v55 = vld [vmem:[%s1528_s0 + $0x8] sm:$0xff]  ;;  %v273_v57 = vld [vmem:[%s1528_s0] sm:$0xff]  ;;  %v276_v58 = vld [vmem:[%s1528_s0 + $0x18] sm:$0xff] }
  0x2b   : > { %376 = vmatprep.subr.mxu0 %v304_v29  ;;  %475 = vmatprep.subr.mxu1 %v1127_v4  ;;  %v275_v59 = vld [vmem:[%s1528_s0 + $0x10] sm:$0xff]  ;;  %v278_v60 = vld [vmem:[%s1528_s0 + $0x28] sm:$0xff]  ;;  %v277_v61 = vld [vmem:[%s1528_s0 + $0x20] sm:$0xff] }
  0x2c   : > { %377 = vmatpush1.msra.mxu0 %v303_v30  ;;  %476 = vmatpush1.msra.mxu1 %v305_v31  ;;  %v280_v62 = vld [vmem:[%s1528_s0 + $0x38] sm:$0xff]  ;;  %v279_v63 = vld [vmem:[%s1528_s0 + $0x30] sm:$0xff]  ;;  %v282_v0 = vld [vmem:[%s1528_s0 + $0x48] sm:$0xff] }
  0x2d   : > { %378 = vmatprep.subr.mxu0 %v301_v32  ;;  %477 = vmatprep.subr.mxu1 %v1127_v4  ;;  %v281_v1 = vld [vmem:[%s1528_s0 + $0x40] sm:$0xff]  ;;  %v284_v2 = vld [vmem:[%s1528_s0 + $0x58] sm:$0xff]  ;;  %v283_v3 = vld [vmem:[%s1528_s0 + $0x50] sm:$0xff] }
  0x2e   : > { %379 = vmatpush1.msra.mxu0 %v300_v33  ;;  %478 = vmatpush1.msra.mxu1 %v302_v34 }
  0x2f   : > { %380 = vmatprep.subr.mxu0 %v298_v35  ;;  %479 = vmatprep.subr.mxu1 %v1127_v4 }
  0x30   : > { %381 = vmatpush1.msra.mxu0 %v297_v36  ;;  %480 = vmatpush1.msra.mxu1 %v299_v37 }
  0x31   : > { %382 = vmatprep.subr.mxu0 %v295_v38  ;;  %481 = vmatprep.subr.mxu1 %v1127_v4 }
  0x32   : > { %383 = vmatpush1.msra.mxu0 %v294_v39  ;;  %482 = vmatpush1.msra.mxu1 %v296_v40 }
  0x33   : > { %384 = vmatprep.subr.mxu0 %v292_v41  ;;  %483 = vmatprep.subr.mxu1 %v1127_v4 }
  0x34   : > { %385 = vmatpush1.msra.mxu0 %v291_v42  ;;  %484 = vmatpush1.msra.mxu1 %v293_v43 }
  0x35   : > { %386 = vmatprep.subr.mxu0 %v289_v44  ;;  %485 = vmatprep.subr.mxu1 %v1127_v4 }
  0x36   : > { %387 = vmatpush1.msra.mxu0 %v288_v45  ;;  %486 = vmatpush1.msra.mxu1 %v290_v46 }
  0x37   : > { %388 = vmatprep.subr.mxu0 %v286_v47  ;;  %487 = vmatprep.subr.mxu1 %v1127_v4 }
  0x38   : > { %389 = vmatpush1.msra.mxu0 %v285_v48  ;;  %488 = vmatpush1.msra.mxu1 %v287_v49 }
  0x39   : > { %418 = vmatprep.subr.mxu0 %v337_v50  ;;  %517 = vmatprep.subr.mxu1 %v1127_v4 }
  0x3a   : > { %419 = vmatpush2.msra.mxu0 %v336_v51  ;;  %518 = vmatpush2.msra.mxu1 %v338_v52 }
  0x3b   : > { %420 = vmatprep.subr.mxu0 %v334_v53  ;;  %519 = vmatprep.subr.mxu1 %v1127_v4 }
  0x3c   : > { %421 = vmatpush2.msra.mxu0 %v333_v54  ;;  %948 = vmatprep.mubr.msk.f32.mxu0 %vm339_vm0, %v274_v55 }
  0x3d   : > { %520 = vmatpush2.msra.mxu1 %v335_v56  ;;  %954 = vmatprep.mubr.msk.f32.mxu1 %vm339_vm0, %v274_v55 }
  0x3e   : > { %423 = vmatmul.mubr.f32.vlgmr.msra.gmra.mxu0 %v273_v57  ;;  %522 = vmatmul.mubr.f32.vlgmr.msra.gmra.mxu1 %v273_v57 }
  0x3f   : > { %949 = vmatprep.mubr.msk.f32.mxu0 %vm339_vm0, %v276_v58  ;;  %955 = vmatprep.mubr.msk.f32.mxu1 %vm339_vm0, %v276_v58 }
  0x42   : > { %429 = vmatmul.mubr.f32.gmra.mxu0 %v275_v59  ;;  %527 = vmatmul.mubr.f32.gmra.mxu1 %v275_v59 }
  0x43   : > { %950 = vmatprep.mubr.msk.f32.mxu0 %vm339_vm0, %v278_v60  ;;  %956 = vmatprep.mubr.msk.f32.mxu1 %vm339_vm0, %v278_v60 }
  0x46   : > { %435 = vmatmul.mubr.f32.gmra.mxu0 %v277_v61  ;;  %532 = vmatmul.mubr.f32.gmra.mxu1 %v277_v61 }
  0x47   : > { %951 = vmatprep.mubr.msk.f32.mxu0 %vm339_vm0, %v280_v62  ;;  %957 = vmatprep.mubr.msk.f32.mxu1 %vm339_vm0, %v280_v62 }
  0x4a   : > { %440 = vmatmul.mubr.f32.gmra.mxu0 %v279_v63  ;;  %537 = vmatmul.mubr.f32.gmra.mxu1 %v279_v63 }
  0x4b   : > { %952 = vmatprep.mubr.msk.f32.mxu0 %vm339_vm0, %v282_v0  ;;  %958 = vmatprep.mubr.msk.f32.mxu1 %vm339_vm0, %v282_v0 }
  0x4e   : > { %446 = vmatmul.mubr.f32.gmra.mxu0 %v281_v1  ;;  %542 = vmatmul.mubr.f32.gmra.mxu1 %v281_v1 }
  0x4f   : > { %953 = vmatprep.mubr.msk.f32.mxu0 %vm339_vm0, %v284_v2  ;;  %959 = vmatprep.mubr.msk.f32.mxu1 %vm339_vm0, %v284_v2 }
  0x52   : > { %452 = vmatmul.mubr.f32.gmra.mxu0 %v283_v3  ;;  %547 = vmatmul.mubr.f32.gmra.mxu1 %v283_v3 }
  0xfe   : > { %v424_v4 = vpop.f32.mrf.mxu0  ;;  %v523_v5 = vpop.f32.mrf.mxu1 }
  0xff   : > { %v569_v12 = vrot.slane %v523_v5, 2  ;;  %v582_v5 = vld [vmem:[#allocation3] sm:$0x1] }
 0x100   : > { %v426_v6 = vpop.f32.mrf.mxu0  ;;  %v525_v7 = vpop.f32.mrf.mxu1 }
 0x101   : > { %v556_v13 = vrot.slane %v426_v6, 1 }
 0x102   : > { %v430_v8 = vpop.f32.mrf.mxu0  ;;  %v528_v9 = vpop.f32.mrf.mxu1 }
 0x103   : > { %v570_v14 = vrot.slane %v528_v9, 2 }
 0x104   : > { %v432_v10 = vpop.f32.mrf.mxu0  ;;  %v530_v11 = vpop.f32.mrf.mxu1 }
 0x105   : > { %v557_v15 = vrot.slane %v432_v10, 1  ;;  %v571_v22 = vsel %vm568_vm2, %v569_v12, %v570_v14  ;;  %v592_v11 = vld [vmem:[#allocation4] sm:$0x1] }
 0x106   : > { %v436_v16 = vpop.f32.mrf.mxu0  ;;  %v533_v17 = vpop.f32.mrf.mxu1 }
 0x107   : > { %v558_v18 = vsel %vm555_vm1, %v556_v13, %v557_v15  ;;  %v572_v23 = vrot.slane %v533_v17, 2 }
 0x108   : > { %v563_v19 = vadd.f32 %v558_v18, %v424_v4  ;;  %v437_v20 = vpop.f32.mrf.mxu0  ;;  %v535_v21 = vpop.f32.mrf.mxu1 }
 0x109   : > { %v559_v24 = vrot.slane %v437_v20, 1  ;;  %v573_v32 = vsel %vm568_vm2, %v570_v14, %v572_v23 }
 0x10a   : > { %v576_v25 = vadd.f32 %v571_v22, %v563_v19  ;;  %v441_v26 = vpop.f32.mrf.mxu0  ;;  %v538_v27 = vpop.f32.mrf.mxu1 }
 0x10b   : > { %v560_v28 = vsel %vm555_vm1, %v557_v15, %v559_v24  ;;  %v619_v41 = vrot.slane %v538_v27, 2 }
 0x10c   : > { %580 = vst [vmem:[#allocation2 + $0x10] sm:$0xff] %v576_v25  ;;  %v564_v29 = vadd.f32 %v560_v28, %v430_v8  ;;  %v443_v30 = vpop.f32.mrf.mxu0  ;;  %v540_v31 = vpop.f32.mrf.mxu1  ;;  %v593_v36 = vmul.f32 %v576_v25, %v576_v25 }
 0x10d   : > { %v607_v42 = vrot.slane %v443_v30, 1 }
 0x10e   : > { %v577_v33 = vadd.f32 %v573_v32, %v564_v29  ;;  %v447_v34 = vpop.f32.mrf.mxu0  ;;  %v543_v35 = vpop.f32.mrf.mxu1 }
 0x10f   : > { %v620_v43 = vrot.slane %v543_v35, 2 }
 0x110   : > { %581 = vst [vmem:[#allocation2] sm:$0xff] %v577_v33  ;;  %v583_v37 = vadd.f32 %v577_v33, %v576_v25  ;;  %v594_v38 = vmul.f32 %v577_v33, %v577_v33  ;;  %v449_v39 = vpop.f32.mrf.mxu0  ;;  %v545_v40 = vpop.f32.mrf.mxu1 }
 0x111   : > { %v608_v44 = vrot.slane %v449_v39, 1  ;;  %v621_v55 = vsel %vm568_vm2, %v619_v41, %v620_v43 }
 0x112   : > { %v584_v45 = vrot.slane %v583_v37, 4  ;;  %v595_v46 = vadd.f32 %v594_v38, %v593_v36  ;;  %v453_v47 = vpop.f32.mrf.mxu0  ;;  %v548_v48 = vpop.f32.mrf.mxu1 }
 0x113   : > { %v609_v49 = vsel %vm555_vm1, %v607_v42, %v608_v44  ;;  %v622_v56 = vrot.slane %v548_v48, 2 }
 0x114   : > { %v585_v50 = vadd.f32 %v584_v45, %v583_v37  ;;  %v596_v51 = vrot.slane %v595_v46, 4  ;;  %v614_v52 = vadd.f32 %v609_v49, %v441_v26  ;;  %v454_v53 = vpop.f32.mrf.mxu0  ;;  %v550_v54 = vpop.f32.mrf.mxu1 }
 0x115   : > { %v610_v57 = vrot.slane %v454_v53, 1  ;;  %v623_v1 = vsel %vm568_vm2, %v620_v43, %v622_v56 }
 0x116   : > { %v586_v58 = vrot.slane %v585_v50, 2  ;;  %v597_v59 = vadd.f32 %v596_v51, %v595_v46  ;;  %v626_v60 = vadd.f32 %v621_v55, %v614_v52 }
 0x117   : > { %v611_v61 = vsel %vm555_vm1, %v608_v44, %v610_v57 }
 0x118   : > { %v587_v62 = vadd.f32 %v586_v58, %v585_v50  ;;  %v598_v63 = vrot.slane %v597_v59, 2  ;;  %960 = vst [vmem:[#allocation2 + $0x18] sm:$0xff] %v626_v60  ;;  %v615_v0 = vadd.f32 %v611_v61, %v447_v34  ;;  %v645_v6 = vmul.f32 %v626_v60, %v626_v60 }
 0x11a   : > { %v588_v2 = vrot.slane %v587_v62, 1  ;;  %v599_v3 = vadd.f32 %v598_v63, %v597_v59  ;;  %v627_v4 = vadd.f32 %v623_v1, %v615_v0 }
 0x11c   : > { %v589_v7 = vadd.f32 %v588_v2, %v587_v62  ;;  %v600_v8 = vrot.slane %v599_v3, 1  ;;  %961 = vst [vmem:[#allocation2 + $0x8] sm:$0xff] %v627_v4  ;;  %v635_v9 = vadd.f32 %v627_v4, %v626_v60  ;;  %v646_v10 = vmul.f32 %v627_v4, %v627_v4 }
 0x11e   : > { %v590_v12 = vadd.f32 %v589_v7, %v582_v5  ;;  %v601_v13 = vadd.f32 %v600_v8, %v599_v3  ;;  %v636_v14 = vrot.slane %v635_v9, 4  ;;  %v647_v15 = vadd.f32 %v646_v10, %v645_v6 }
 0x120   : > { %591 = vst [vmem:[#allocation3] sm:$0x1] %v590_v12  ;;  %v602_v16 = vadd.f32 %v601_v13, %v592_v11  ;;  %v637_v17 = vadd.f32 %v636_v14, %v635_v9  ;;  %v648_v18 = vrot.slane %v647_v15, 4 }
 0x122   : > { %603 = vst [vmem:[#allocation4] sm:$0x1] %v602_v16  ;;  %v638_v19 = vrot.slane %v637_v17, 2  ;;  %v649_v20 = vadd.f32 %v648_v18, %v647_v15 }
 0x124   : > { %v639_v21 = vadd.f32 %v638_v19, %v637_v17  ;;  %v650_v22 = vrot.slane %v649_v20, 2 }
 0x126   : > { %v640_v23 = vrot.slane %v639_v21, 1  ;;  %v651_v24 = vadd.f32 %v650_v22, %v649_v20 }
 0x127   : > { %v634_v27 = vld [vmem:[#allocation3] sm:$0x1] }
 0x128   : > { %v641_v25 = vadd.f32 %v640_v23, %v639_v21  ;;  %v652_v26 = vrot.slane %v651_v24, 1 }
 0x129   : > { %v644_v30 = vld [vmem:[#allocation4] sm:$0x1] }
 0x12a   : > { %v642_v28 = vadd.f32 %v641_v25, %v634_v27  ;;  %v653_v29 = vadd.f32 %v652_v26, %v651_v24 }
 0x12c   : > { %643 = vst [vmem:[#allocation3] sm:$0x1] %v642_v28  ;;  %v654_v31 = vadd.f32 %v653_v29, %v644_v30 }
 0x12e   : > { %655 = vst [vmem:[#allocation4] sm:$0x1] %v654_v31 }
 0x12f PF: > { %p962_p6 = scmp.ne.s32.totalorder %s1116_s18, 1 }
 0x131   : > { %659 = sbr.rel (%p962_p6) target bundleno = 575 (0x23f), region = 52 }
 0x136   : > { %v676_v32 = vld [vmem:[%s1532_s4 + $0x78] sm:$0xff]  ;;  %v1128_v33 = vmov 0.0   ;;  %v675_v34 = vld [vmem:[%s1532_s4 + $0x70] sm:$0xff]  ;;  %v674_v35 = vld [vmem:[%s1532_s4 + $0x68] sm:$0xff]  ;;  %vm1129_vm3 = vmmov 0   ;;  %v837_v61 = vlaneseq }
 0x137   : > { %1002 = vmatprep.subr.mxu0 %v1128_v33  ;;  %1037 = vmatprep.subr.mxu1 %v1128_v33  ;;  %v673_v36 = vld [vmem:[%s1532_s4 + $0x60] sm:$0xff]  ;;  %v672_v37 = vld [vmem:[%s1532_s4 + $0x58] sm:$0xff]  ;;  %v671_v38 = vld [vmem:[%s1532_s4 + $0x50] sm:$0xff] }
 0x138   : > { %1003 = vmatpush3.msra.mxu0 %v676_v32  ;;  %1038 = vmatpush3.msra.mxu1 %v676_v32  ;;  %v670_v39 = vld [vmem:[%s1532_s4 + $0x48] sm:$0xff]  ;;  %v669_v40 = vld [vmem:[%s1532_s4 + $0x40] sm:$0xff]  ;;  %v668_v41 = vld [vmem:[%s1532_s4 + $0x38] sm:$0xff]  ;;  %v838_v62 = vshrl.u32 %v837_v61, 7 }
 0x139   : > { %1004 = vmatprep.subr.mxu0 %v1128_v33  ;;  %1039 = vmatprep.subr.mxu1 %v1128_v33  ;;  %v667_v42 = vld [vmem:[%s1532_s4 + $0x30] sm:$0xff]  ;;  %v666_v43 = vld [vmem:[%s1532_s4 + $0x28] sm:$0xff]  ;;  %v665_v44 = vld [vmem:[%s1532_s4 + $0x20] sm:$0xff] }
 0x13a   : > { %1005 = vmatpush3.msra.mxu0 %v675_v34  ;;  %1040 = vmatpush3.msra.mxu1 %v675_v34  ;;  %v664_v45 = vld [vmem:[%s1532_s4 + $0x18] sm:$0xff]  ;;  %v663_v46 = vld [vmem:[%s1532_s4 + $0x10] sm:$0xff]  ;;  %v662_v47 = vld [vmem:[%s1532_s4 + $0x8] sm:$0xff]  ;;  %v839_v0 = vsub.s32 0, %v838_v62 }
 0x13b   : > { %1006 = vmatprep.subr.mxu0 %v1128_v33  ;;  %1041 = vmatprep.subr.mxu1 %v1128_v33  ;;  %v661_v48 = vld [vmem:[%s1532_s4] sm:$0xff]  ;;  %v832_v5 = vld [vmem:[#allocation2 + $0x10] sm:$0xff]  ;;  %v834_v8 = vld [vmem:[#allocation2 + $0x18] sm:$0xff] }
 0x13c   : > { %1007 = vmatpush3.msra.mxu0 %v674_v35  ;;  %1042 = vmatpush3.msra.mxu1 %v674_v35  ;;  %v660_v49 = vld [vmem:[#allocation3] sm:$0x1]  ;;  %v747_v50 = vld [vmem:[#allocation4] sm:$0x1]  ;;  %v835_v9 = vld [vmem:[#allocation2 + $0x8] sm:$0xff] }
 0x13d   : > { %1008 = vmatprep.subr.mxu0 %v1128_v33  ;;  %1043 = vmatprep.subr.mxu1 %v1128_v33  ;;  %v823_v63 = vld [vmem:[%s1530_s2] sm:$0x1] }
 0x13e   : > { %1009 = vmatpush3.msra.mxu0 %v673_v36  ;;  %1044 = vmatpush3.msra.mxu1 %v673_v36  ;;  %v827_v3 = vld [vmem:[%s1531_s3] sm:$0x1] }
 0x13f   : > { %1010 = vmatprep.subr.mxu0 %v1128_v33  ;;  %1045 = vmatprep.subr.mxu1 %v1128_v33  ;;  %v833_v7 = vld [vmem:[#allocation2] sm:$0xff] }
 0x140   : > { %1011 = vmatpush3.msra.mxu0 %v672_v37  ;;  %1046 = vmatpush3.msra.mxu1 %v672_v37 }
 0x141   : > { %1012 = vmatprep.subr.mxu0 %v1128_v33  ;;  %1047 = vmatprep.subr.mxu1 %v1128_v33 }
 0x142   : > { %1013 = vmatpush3.msra.mxu0 %v671_v38  ;;  %1048 = vmatpush3.msra.mxu1 %v671_v38 }
 0x143   : > { %1014 = vmatprep.subr.mxu0 %v1128_v33  ;;  %1049 = vmatprep.subr.mxu1 %v1128_v33 }
 0x144   : > { %1015 = vmatpush3.msra.mxu0 %v670_v39  ;;  %1050 = vmatpush3.msra.mxu1 %v670_v39 }
 0x145   : > { %1016 = vmatprep.subr.mxu0 %v1128_v33  ;;  %1051 = vmatprep.subr.mxu1 %v1128_v33 }
 0x146   : > { %1017 = vmatpush3.msra.mxu0 %v669_v40  ;;  %1052 = vmatpush3.msra.mxu1 %v669_v40 }
 0x147   : > { %1018 = vmatprep.subr.mxu0 %v1128_v33  ;;  %1053 = vmatprep.subr.mxu1 %v1128_v33 }
 0x148   : > { %1019 = vmatpush3.msra.mxu0 %v668_v41  ;;  %1054 = vmatpush3.msra.mxu1 %v668_v41 }
 0x149   : > { %1020 = vmatprep.subr.mxu0 %v1128_v33  ;;  %1055 = vmatprep.subr.mxu1 %v1128_v33 }
 0x14a   : > { %1021 = vmatpush3.msra.mxu0 %v667_v42  ;;  %1056 = vmatpush3.msra.mxu1 %v667_v42 }
 0x14b   : > { %1022 = vmatprep.subr.mxu0 %v1128_v33  ;;  %1057 = vmatprep.subr.mxu1 %v1128_v33 }
 0x14c   : > { %1023 = vmatpush3.msra.mxu0 %v666_v43  ;;  %1058 = vmatpush3.msra.mxu1 %v666_v43 }
 0x14d   : > { %1024 = vmatprep.subr.mxu0 %v1128_v33  ;;  %1059 = vmatprep.subr.mxu1 %v1128_v33 }
 0x14e   : > { %1025 = vmatpush3.msra.mxu0 %v665_v44  ;;  %1060 = vmatpush3.msra.mxu1 %v665_v44 }
 0x14f   : > { %1026 = vmatprep.subr.mxu0 %v1128_v33  ;;  %1061 = vmatprep.subr.mxu1 %v1128_v33 }
 0x150   : > { %1027 = vmatpush3.msra.mxu0 %v664_v45  ;;  %1062 = vmatpush3.msra.mxu1 %v664_v45 }
 0x151   : > { %1028 = vmatprep.subr.mxu0 %v1128_v33  ;;  %1063 = vmatprep.subr.mxu1 %v1128_v33 }
 0x152   : > { %1029 = vmatpush3.msra.mxu0 %v663_v46  ;;  %1064 = vmatpush3.msra.mxu1 %v663_v46 }
 0x153   : > { %1030 = vmatprep.subr.mxu0 %v1128_v33  ;;  %1065 = vmatprep.subr.mxu1 %v1128_v33 }
 0x154   : > { %1031 = vmatpush3.msra.mxu0 %v662_v47  ;;  %1066 = vmatpush3.msra.mxu1 %v662_v47 }
 0x155   : > { %1032 = vmatprep.subr.mxu0 %v1128_v33  ;;  %1067 = vmatprep.subr.mxu1 %v1128_v33 }
 0x156   : > { %1033 = vmatpush3.msra.mxu0 %v661_v48  ;;  %1034 = vmatprep.mubr.msk.f32.mxu0 %vm1129_vm3, %v1128_v33 }
 0x157   : > { %1068 = vmatpush3.msra.mxu1 %v661_v48  ;;  %1069 = vmatprep.mubr.msk.f32.mxu1 %vm1129_vm3, %v1128_v33 }
 0x158   : > { %1035 = vmatmul.mubr.f32.vlgmr.msra.gmra.mxu0 %v660_v49  ;;  %1070 = vmatmul.mubr.f32.vlgmr.msra.gmra.mxu1 %v747_v50 }
 0x218   : > { %v743_v51 = vpop.f32.mrf.mxu0  ;;  %v814_v52 = vpop.f32.mrf.mxu1 }
 0x219   : > { %v818_v53 = vmul.f32 0.001953125, %v743_v51  ;;  %v819_v54 = vmul.f32 0.001953125, %v814_v52 }
 0x21a   : > { %v1036_v55 = vpop.f32.mrf.mxu0  ;;  %v1071_v56 = vpop.f32.mrf.mxu1 }
 0x21b   : > { %v820_v57 = vmul.f32 %v818_v53, %v818_v53 }
 0x21d   : > { %v821_v58 = vsub.f32 %v819_v54, %v820_v57 }
 0x21f   : > { %v822_v59 = vmax.f32 %v821_v58, 0.0 }
 0x221   : > { %v824_v60 = vadd.f32 1e-05, %v822_v59 }
 0x223   : > { %1100 = vrsqrt.f32 %v824_v60 }
 0x230   : > { %v1101_v1 = vpop.eup %1100 }
 0x231   : > { %v826_v2 = vmul.f32 %v1101_v1, %v823_v63 }
 0x233   : > { %v828_v4 = vmul.f32 %v826_v2, %v818_v53  ;;  %v840_v6 = vrot.slane %v826_v2, %v839_v0 }
 0x235   : > { %v829_v10 = vsub.f32 %v827_v3, %v828_v4  ;;  %v842_v11 = vmul.f32 %v840_v6, %v832_v5  ;;  %v843_v12 = vmul.f32 %v840_v6, %v833_v7  ;;  %v844_v13 = vmul.f32 %v840_v6, %v834_v8 }
 0x236   : > { %v845_v14 = vmul.f32 %v840_v6, %v835_v9 }
 0x237   : > { %v850_v15 = vrot.slane %v829_v10, %v839_v0 }
 0x239   : > { %v852_v16 = vadd.f32 %v850_v15, %v842_v11  ;;  %v853_v17 = vadd.f32 %v850_v15, %v843_v12  ;;  %v854_v18 = vadd.f32 %v850_v15, %v844_v13  ;;  %v855_v19 = vadd.f32 %v850_v15, %v845_v14 }
 0x23b   : > { %v856_v20 = vmax.f32 %v852_v16, 0.0  ;;  %v857_v21 = vmax.f32 %v853_v17, 0.0  ;;  %v858_v22 = vmax.f32 %v854_v18, 0.0  ;;  %v859_v23 = vmax.f32 %v855_v19, 0.0 }
 0x23d   : > { %860 = vst [vmem:[%s1533_s5] sm:$0xff] %v856_v20  ;;  %861 = vst [vmem:[%s1533_s5 + $0x8] sm:$0xff] %v857_v21 }
 0x23e   : > { %862 = vst [vmem:[%s1533_s5 + $0x10] sm:$0xff] %v858_v22  ;;  %863 = vst [vmem:[%s1533_s5 + $0x18] sm:$0xff] %v859_v23 }
 0x23f PF: > { %s15_s20 = sadd.s32 1, %s1124_s20   ;;  %s1534_s18 = smov %s1120_s19 }
 0x240   : > { %p12_p7 = scmp.ge.s32.totalorder %s15_s20, 4   ;;  %s1535_s19 = smov %s1537_s21 }
 0x242   :  { %14 = sbr.rel (!%p12_p7) target bundleno = 2 (0x2), region = 85 }

</bundles_post_ra>
